<compile_context>
chip_gen: v7x
topology: tpu7x:2x2x1
jax: 0.10.0
libtpu: 0.0.40
codegen_flags: <defaults>
</compile_context>

<pallas_src>
import math
import functools

import jax
import jax.numpy as jnp
from jax.experimental import pallas as pl
from jax.experimental.pallas import tpu as pltpu


def _level_specs(h, w, num_levels):
    """Static per-level pooling geometry (stride == kernel), mirroring PyTorch."""
    specs = []
    for i in range(num_levels):
        level = i + 1
        kh, kw = math.ceil(h / level), math.ceil(w / level)
        ph = math.floor((kh * level - h + 1) / 2)
        pw = math.floor((kw * level - w + 1) / 2)
        oh = (h + 2 * ph - kh) // kh + 1   # PyTorch pooling output-size formula
        ow = (w + 2 * pw - kw) // kw + 1
        specs.append((level, kh, kw, ph, pw, oh, ow))
    return specs


def _spp_kernel(x_ref, o_ref, *, specs, pool_type, use_hier_l1, finest_level):
    # x_ref: (nb, H, W, Ct) channels-last block; o_ref: (nb, P_total, Ct), C on lanes.
    x = x_ref[...].astype(jnp.float32)          # f32 accumulation (v5e / avg accuracy)
    H, W = x.shape[1], x.shape[2]
    is_max = (pool_type == 'max_pool')
    finest = []   # finest-level window maxima, reused for hierarchical level-1 max

    for (level, kh, kw, ph, pw, oh, ow, base) in reversed(specs):
        if level == 1 and use_hier_l1:
            # Global max == max of finest-level window maxima (windows tile the image).
            g = finest[0]
            for p in finest[1:]:
                g = jnp.maximum(g, p)
            o_ref[:, base:base + 1, :] = g.astype(o_ref.dtype)
            continue

        inv = 1.0 / float(kh * kw)              # count_include_pad=True divisor
        for j in range(ow):
            c0 = j * kw - pw
            c1 = min(c0 + kw, W)
            seg = x[:, :, max(c0, 0):c1, :]     # clamped slice == -inf / zero padding
            colred = jnp.max(seg, axis=2) if is_max else jnp.sum(seg, axis=2)  # (nb,H,Ct)
            for i in range(oh):
                r0 = i * kh - ph
                r1 = min(r0 + kh, H)
                win = colred[:, max(r0, 0):r1, :]                      # (nb, kh', Ct)
                if is_max:
                    r = jnp.max(win, axis=1, keepdims=True)            # (nb, 1, Ct)
                else:
                    r = jnp.sum(win, axis=1, keepdims=True) * inv
                col = base + j * oh + i
                o_ref[:, col:col + 1, :] = r.astype(o_ref.dtype)       # full-lane store
                if use_hier_l1 and level == finest_level:
                    finest.append(r)


def _choose_tiles(n, c, h, w, p_total, itemsize, budget_bytes=4 << 20):
    """Pick (batch_block, channel_tile) so double-buffered in+out blocks fit a budget."""
    def blk_bytes(nb, ct):
        return 2 * nb * (h * w + p_total) * ct * itemsize   # ~double-buffered in + out

    c_tile = c
    if blk_bytes(1, c) > budget_bytes and c % 128 == 0:
        ct = (budget_bytes // (2 * (h * w + p_total) * itemsize)) // 128 * 128
        ct = int(min(max(ct, 128), c))
        while c % ct != 0:
            ct -= 128
        c_tile = ct

    nb = 1
    for cand in range(min(n, 128), 0, -1):      # fold batch: amortize ~0.35us/grid step
        if n % cand == 0 and blk_bytes(cand, c_tile) <= budget_bytes:
            nb = cand
            break
    return nb, c_tile


def spp_layer(x, num_levels=2, pool_type='max_pool'):
    n, c, h, w = x.shape
    specs = _level_specs(h, w, num_levels)

    kspecs, p_total = [], 0
    for (level, kh, kw, ph, pw, oh, ow) in specs:
        kspecs.append((level, kh, kw, ph, pw, oh, ow, p_total))
        p_total += oh * ow

    lF, khF, kwF, phF, pwF, ohF, owF = specs[-1]
    use_hier_l1 = (pool_type == 'max_pool' and num_levels >= 2
                   and ohF * khF - phF >= h and owF * kwF - pwF >= w)

    xt = jnp.transpose(x, (0, 2, 3, 1))         # NHWC: channels ride the 128-lane axis

    itemsize = jnp.dtype(x.dtype).itemsize
    nb, c_tile = _choose_tiles(n, c, h, w, p_total, itemsize)
    grid = (n // nb, pl.cdiv(c, c_tile))

    block_bytes = nb * (h * w + p_total) * c_tile * itemsize
    vmem_limit = int(min(max(16 << 20, 8 * block_bytes + (4 << 20)), 48 << 20))

    kernel = functools.partial(
        _spp_kernel, specs=tuple(kspecs), pool_type=pool_type,
        use_hier_l1=use_hier_l1, finest_level=specs[-1][0])

    out = pl.pallas_call(
        kernel,
        out_shape=jax.ShapeDtypeStruct((n, p_total, c), x.dtype),
        grid_spec=pltpu.PrefetchScalarGridSpec(
            num_scalar_prefetch=0,
            grid=grid,
            in_specs=[pl.BlockSpec((nb, h, w, c_tile), lambda b, ci: (b, 0, 0, ci))],
            out_specs=pl.BlockSpec((nb, p_total, c_tile), lambda b, ci: (b, 0, ci)),
        ),
        compiler_params=pltpu.CompilerParams(
            dimension_semantics=("parallel", "parallel"),
            vmem_limit_bytes=vmem_limit,
        ),
    )(xt)

    # Reorder kernel layout (N, P, C) — per-level columns are (ow-major, then oh) —
    # into the torch ordering: per level, flatten of (C, oh, ow), levels concatenated.
    pieces = []
    for (level, kh, kw, ph, pw, oh, ow, base) in kspecs:
        lvl = out[:, base:base + oh * ow, :]                       # (n, ow*oh, c)
        lvl = lvl.reshape(n, ow, oh, c).transpose(0, 3, 2, 1)      # (n, c, oh, ow)
        pieces.append(lvl.reshape(n, -1))
    return jnp.concatenate(pieces, axis=1)


def spp_reference(x, num_levels=2, pool_type='max_pool'):
    """Pure-JAX reference reproducing the PyTorch SPP_Layer forward."""
    n, c, h, w = x.shape
    specs = _level_specs(h, w, num_levels)
    pieces = []
    for (level, kh, kw, ph, pw, oh_n, ow_n) in specs:
        cols = []
        for i in range(oh_n):
            for j in range(ow_n):
                r0, c0 = i * kh - ph, j * kw - pw
                r1, c1 = min(r0 + kh, h), min(c0 + kw, w)
                win = x[:, :, max(r0, 0):r1, max(c0, 0):c1].astype(jnp.float32)
                if pool_type == 'max_pool':
                    cols.append(jnp.max(win, axis=(2, 3)))
                else:
                    cols.append(jnp.sum(win, axis=(2, 3)) / float(kh * kw))
        lvl = jnp.stack(cols, axis=2)            # (N, C, oh*ow), (i, j) row-major
        pieces.append(lvl.reshape(n, -1))
    return jnp.concatenate(pieces, axis=1).astype(x.dtype)


# TODO(synk): SPP_Net2's Conv2d/ReLU/MaxPool feature stack and Linear classifier are
# standard dense ops (left to XLA); this kernel implements the custom SPP_Layer stage.

if __name__ == "__main__":
    key = jax.random.PRNGKey(0)

    # Primary case: matches SPP_Net2's pool = SPP_Layer(2, 'max_pool').
    x = jax.random.normal(key, (2, 4, 16, 16), dtype=jnp.float32)   # N, C, H, W
    out = jax.block_until_ready(spp_layer(x, num_levels=2, pool_type='max_pool'))
    ref = spp_reference(x, num_levels=2, pool_type='max_pool')
    assert out.shape == (2, 4 * (1 + 4)), out.shape
    assert jnp.allclose(out, ref, atol=1e-5, rtol=1e-5), "max_pool mismatch"

    # avg_pool path on the same input (non-hierarchical level 1).
    out_a = jax.block_until_ready(spp_layer(x, num_levels=2, pool_type='avg_pool'))
    ref_a = spp_reference(x, num_levels=2, pool_type='avg_pool')
    assert jnp.allclose(out_a, ref_a, atol=1e-5, rtol=1e-5), "avg_pool mismatch"

    # Non-divisible spatial dims (exercises the implicit-padding / clamped windows).
    x2 = jax.random.normal(jax.random.PRNGKey(0), (2, 4, 15, 12), dtype=jnp.float32)
    out_p = jax.block_until_ready(spp_layer(x2, num_levels=3, pool_type='max_pool'))
    ref_p = spp_reference(x2, num_levels=3, pool_type='max_pool')
    assert jnp.allclose(out_p, ref_p, atol=1e-5, rtol=1e-5), "padded-geometry mismatch"

    print("KERNEL_OK")
</pallas_src>

<mosaic_0001>
module attributes {stable_mosaic.version = 11 : i64} {
  func.func @_spp_kernel(%arg0: i32, %arg1: i32, %arg2: memref<2x16x16x4xf32, #tpu.memory_space<vmem>>, %arg3: memref<2x5x4xf32, #tpu.memory_space<vmem>>) attributes {dimension_semantics = [#tpu.dimension_semantics<parallel>, #tpu.dimension_semantics<parallel>], iteration_bounds = array<i64: 1, 1>, scalar_prefetch = 0 : i64, scratch_operands = 0 : i64, tpu.core_type = #tpu.core_type<tc>, window_params = [{transform_indices = @transform_0, window_bounds = array<i64: 2, 16, 16, 4>}, {transform_indices = @transform_1, window_bounds = array<i64: 2, 5, 4>}]} {
    %c0 = arith.constant 0 : index
    %c0_0 = arith.constant 0 : index
    %c0_1 = arith.constant 0 : index
    %c0_2 = arith.constant 0 : index
    %0 = vector.load %arg2[%c0, %c0_0, %c0_1, %c0_2] : memref<2x16x16x4xf32, #tpu.memory_space<vmem>>, vector<2x16x16x4xf32>
    %1 = vector.extract_strided_slice %0 {offsets = [0, 0, 0, 0], sizes = [2, 16, 8, 4], strides = [1, 1, 1, 1]} : vector<2x16x16x4xf32> to vector<2x16x8x4xf32>
    %cst = arith.constant dense<0xFF800000> : vector<2x16x4xf32>
    %2 = vector.multi_reduction <maximumf>, %1, %cst [2] : vector<2x16x8x4xf32> to vector<2x16x4xf32>
    %3 = vector.extract_strided_slice %2 {offsets = [0, 0, 0], sizes = [2, 8, 4], strides = [1, 1, 1]} : vector<2x16x4xf32> to vector<2x8x4xf32>
    %cst_3 = arith.constant dense<0xFF800000> : vector<2x4xf32>
    %4 = vector.multi_reduction <maximumf>, %3, %cst_3 [1] : vector<2x8x4xf32> to vector<2x4xf32>
    %5 = vector.shape_cast %4 : vector<2x4xf32> to vector<2x1x4xf32>
    %c0_4 = arith.constant 0 : index
    %c1 = arith.constant 1 : index
    %c0_5 = arith.constant 0 : index
    %6 = vector.load %arg3[%c0_4, %c1, %c0_5] : memref<2x5x4xf32, #tpu.memory_space<vmem>>, vector<2x1x4xf32>
    tpu.vector_store %arg3[%c0_4, %c1, %c0_5], %5 {strides = array<i32>} : memref<2x5x4xf32, #tpu.memory_space<vmem>>, vector<2x1x4xf32>,
    %7 = vector.extract_strided_slice %2 {offsets = [0, 8, 0], sizes = [2, 8, 4], strides = [1, 1, 1]} : vector<2x16x4xf32> to vector<2x8x4xf32>
    %cst_6 = arith.constant dense<0xFF800000> : vector<2x4xf32>
    %8 = vector.multi_reduction <maximumf>, %7, %cst_6 [1] : vector<2x8x4xf32> to vector<2x4xf32>
    %9 = vector.shape_cast %8 : vector<2x4xf32> to vector<2x1x4xf32>
    %c0_7 = arith.constant 0 : index
    %c2 = arith.constant 2 : index
    %c0_8 = arith.constant 0 : index
    %10 = vector.load %arg3[%c0_7, %c2, %c0_8] : memref<2x5x4xf32, #tpu.memory_space<vmem>>, vector<2x1x4xf32>
    tpu.vector_store %arg3[%c0_7, %c2, %c0_8], %9 {strides = array<i32>} : memref<2x5x4xf32, #tpu.memory_space<vmem>>, vector<2x1x4xf32>,
    %11 = vector.extract_strided_slice %0 {offsets = [0, 0, 8, 0], sizes = [2, 16, 8, 4], strides = [1, 1, 1, 1]} : vector<2x16x16x4xf32> to vector<2x16x8x4xf32>
    %cst_9 = arith.constant dense<0xFF800000> : vector<2x16x4xf32>
    %12 = vector.multi_reduction <maximumf>, %11, %cst_9 [2] : vector<2x16x8x4xf32> to vector<2x16x4xf32>
    %13 = vector.extract_strided_slice %12 {offsets = [0, 0, 0], sizes = [2, 8, 4], strides = [1, 1, 1]} : vector<2x16x4xf32> to vector<2x8x4xf32>
    %cst_10 = arith.constant dense<0xFF800000> : vector<2x4xf32>
    %14 = vector.multi_reduction <maximumf>, %13, %cst_10 [1] : vector<2x8x4xf32> to vector<2x4xf32>
    %15 = vector.shape_cast %14 : vector<2x4xf32> to vector<2x1x4xf32>
    %c0_11 = arith.constant 0 : index
    %c3 = arith.constant 3 : index
    %c0_12 = arith.constant 0 : index
    %16 = vector.load %arg3[%c0_11, %c3, %c0_12] : memref<2x5x4xf32, #tpu.memory_space<vmem>>, vector<2x1x4xf32>
    tpu.vector_store %arg3[%c0_11, %c3, %c0_12], %15 {strides = array<i32>} : memref<2x5x4xf32, #tpu.memory_space<vmem>>, vector<2x1x4xf32>,
    %17 = vector.extract_strided_slice %12 {offsets = [0, 8, 0], sizes = [2, 8, 4], strides = [1, 1, 1]} : vector<2x16x4xf32> to vector<2x8x4xf32>
    %cst_13 = arith.constant dense<0xFF800000> : vector<2x4xf32>
    %18 = vector.multi_reduction <maximumf>, %17, %cst_13 [1] : vector<2x8x4xf32> to vector<2x4xf32>
    %19 = vector.shape_cast %18 : vector<2x4xf32> to vector<2x1x4xf32>
    %c0_14 = arith.constant 0 : index
    %c4 = arith.constant 4 : index
    %c0_15 = arith.constant 0 : index
    %20 = vector.load %arg3[%c0_14, %c4, %c0_15] : memref<2x5x4xf32, #tpu.memory_space<vmem>>, vector<2x1x4xf32>
    tpu.vector_store %arg3[%c0_14, %c4, %c0_15], %19 {strides = array<i32>} : memref<2x5x4xf32, #tpu.memory_space<vmem>>, vector<2x1x4xf32>,
    %21 = arith.maximumf %5, %9 : vector<2x1x4xf32>
    %22 = arith.maximumf %21, %15 : vector<2x1x4xf32>
    %23 = arith.maximumf %22, %19 : vector<2x1x4xf32>
    %c0_16 = arith.constant 0 : index
    %c0_17 = arith.constant 0 : index
    %c0_18 = arith.constant 0 : index
    %24 = vector.load %arg3[%c0_16, %c0_17, %c0_18] : memref<2x5x4xf32, #tpu.memory_space<vmem>>, vector<2x1x4xf32>
    tpu.vector_store %arg3[%c0_16, %c0_17, %c0_18], %23 {strides = array<i32>} : memref<2x5x4xf32, #tpu.memory_space<vmem>>, vector<2x1x4xf32>,
    return
  }
  func.func @transform_0(%arg0: i32, %arg1: i32) -> (i32, i32, i32, i32) {
    %c0_i32 = arith.constant 0 : i32
    %c0_i32_0 = arith.constant 0 : i32
    %c0_i32_1 = arith.constant 0 : i32
    return %arg0, %c0_i32, %c0_i32_0, %arg1 : i32, i32, i32, i32
  }
  func.func @transform_1(%arg0: i32, %arg1: i32) -> (i32, i32, i32) {
    %c0_i32 = arith.constant 0 : i32
    %c0_i32_0 = arith.constant 0 : i32
    return %arg0, %c0_i32, %arg1 : i32, i32, i32
  }
}

</mosaic_0001>

<bundles_post_ra>
// kernel: tpu_custom_call.1
= control target key start
LH: loop header
LB: loop body
LE: loop exit
PB: predicated region body
PF: predicated region fallthrough
CT: control target
= control target key end

     0   :  { %vm72_vm0 = vcmask 31744   ;;  %vm327_vm1 = vcmask 24576   ;;  %s1205_s0 = inlined_call_operand.vmem [shape: f32[2,16,16,4], index: 0, kind: input, shape index: {}]   ;;  %s1206_s1 = inlined_call_operand.vmem [shape: f32[2,5,4], index: 1, kind: output, shape index: {}]  }
   0x1   :  { %v8_v0 = vld [vmem:[%s1205_s0] sm:$0xff]  ;;  %v10_v1 = vld [vmem:[%s1205_s0 + $0x10] sm:$0xff]  ;;  %v9_v35 = vld [vmem:[%s1205_s0 + $0x8] sm:$0xff] }
   0x2   :  { %v12_v2 = vld [vmem:[%s1205_s0 + $0x20] sm:$0xff]  ;;  %v73_v3 = vsel %vm72_vm0, %v8_v0, -inf  ;;  %v80_v4 = vsel %vm72_vm0, %v10_v1, -inf  ;;  %v14_v5 = vld [vmem:[%s1205_s0 + $0x30] sm:$0xff]  ;;  %v716_v53 = vsel %vm72_vm0, %v9_v35, -inf }
   0x3   :  { %v16_v6 = vld [vmem:[%s1205_s0 + $0x40] sm:$0xff]  ;;  %v74_v7 = vrot.slane %v73_v3, 4  ;;  %v81_v8 = vrot.slane %v80_v4, 4  ;;  %v87_v9 = vsel %vm72_vm0, %v12_v2, -inf  ;;  %v18_v10 = vld [vmem:[%s1205_s0 + $0x50] sm:$0xff]  ;;  %v94_v12 = vsel %vm72_vm0, %v14_v5, -inf }
   0x4   :  { %v88_v11 = vrot.slane %v87_v9, 4  ;;  %v101_v13 = vsel %vm72_vm0, %v16_v6, -inf  ;;  %v20_v14 = vld [vmem:[%s1205_s0 + $0x60] sm:$0xff]  ;;  %v22_v15 = vld [vmem:[%s1205_s0 + $0x70] sm:$0xff]  ;;  %v95_v18 = vrot.slane %v94_v12, 4  ;;  %v108_v21 = vsel %vm72_vm0, %v18_v10, -inf }
   0x5   :  { %v75_v16 = vmax.f32 %v73_v3, %v74_v7  ;;  %v82_v17 = vmax.f32 %v80_v4, %v81_v8  ;;  %v102_v19 = vrot.slane %v101_v13, 4  ;;  %v115_v22 = vsel %vm72_vm0, %v20_v14, -inf  ;;  %v24_v44 = vld [vmem:[%s1205_s0 + $0x80] sm:$0xff]  ;;  %v26_v45 = vld [vmem:[%s1205_s0 + $0x90] sm:$0xff] }
   0x6   :  { %v89_v20 = vmax.f32 %v87_v9, %v88_v11  ;;  %v122_v23 = vsel %vm72_vm0, %v22_v15, -inf  ;;  %v96_v26 = vmax.f32 %v94_v12, %v95_v18  ;;  %v109_v29 = vrot.slane %v108_v21, 4  ;;  %v28_v54 = vld [vmem:[%s1205_s0 + $0xa0] sm:$0xff]  ;;  %v30_v55 = vld [vmem:[%s1205_s0 + $0xb0] sm:$0xff] }
   0x7   :  { %v76_v24 = vrot.slane %v75_v16, 2  ;;  %v83_v25 = vrot.slane %v82_v17, 2  ;;  %v103_v27 = vmax.f32 %v101_v13, %v102_v19  ;;  %v116_v30 = vrot.slane %v115_v22, 4  ;;  %v32_v0 = vld [vmem:[%s1205_s0 + $0xc0] sm:$0xff]  ;;  %v34_v5 = vld [vmem:[%s1205_s0 + $0xd0] sm:$0xff] }
   0x8   :  { %v90_v28 = vrot.slane %v89_v20, 2  ;;  %v97_v33 = vrot.slane %v96_v26, 2  ;;  %v110_v37 = vmax.f32 %v108_v21, %v109_v29  ;;  %v123_v39 = vrot.slane %v122_v23, 4  ;;  %v36_v14 = vld [vmem:[%s1205_s0 + $0xe0] sm:$0xff]  ;;  %v38_v15 = vld [vmem:[%s1205_s0 + $0xf0] sm:$0xff] }
   0x9   :  { %v77_v31 = vmax.f32 %v75_v16, %v76_v24  ;;  %v84_v32 = vmax.f32 %v82_v17, %v83_v25  ;;  %v104_v34 = vrot.slane %v103_v27, 2  ;;  %v117_v38 = vmax.f32 %v115_v22, %v116_v30 }
   0xa   :  { %v91_v36 = vmax.f32 %v89_v20, %v90_v28  ;;  %v98_v42 = vmax.f32 %v96_v26, %v97_v33  ;;  %v111_v47 = vrot.slane %v110_v37, 2  ;;  %v124_v49 = vmax.f32 %v122_v23, %v123_v39 }
   0xb   :  { %v78_v40 = vrot.slane %v77_v31, 1  ;;  %v85_v41 = vrot.slane %v84_v32, 1  ;;  %v105_v43 = vmax.f32 %v103_v27, %v104_v34  ;;  %v118_v48 = vrot.slane %v117_v38, 2 }
   0xc   :  { %v92_v46 = vrot.slane %v91_v36, 1  ;;  %v99_v51 = vrot.slane %v98_v42, 1  ;;  %v112_v57 = vmax.f32 %v110_v37, %v111_v47  ;;  %v125_v59 = vrot.slane %v124_v49, 2 }
   0xd   :  { %v713_v50 = vmax.f32 %v77_v31, %v78_v40  ;;  %v106_v52 = vrot.slane %v105_v43, 1  ;;  %v724_v56 = vmax.f32 %v84_v32, %v85_v41  ;;  %v119_v58 = vmax.f32 %v117_v38, %v118_v48  ;;  %v40_v40 = vld [vmem:[%s1205_s0 + $0x100] sm:$0xff] }
   0xe   :  { %v726_v60 = vmax.f32 %v91_v36, %v92_v46  ;;  %v728_v61 = vmax.f32 %v98_v42, %v99_v51  ;;  %v129_v62 = vsel %vm72_vm0, %v24_v44, -inf  ;;  %v136_v63 = vsel %vm72_vm0, %v26_v45, -inf }
   0xf   :  { %v113_v1 = vrot.slane %v112_v57, 1  ;;  %v120_v2 = vrot.slane %v119_v58, 1  ;;  %v126_v3 = vmax.f32 %v124_v49, %v125_v59  ;;  %v130_v4 = vrot.slane %v129_v62, 4  ;;  %v42_v49 = vld [vmem:[%s1205_s0 + $0x110] sm:$0xff] }
  0x10   :  { %v738_v6 = vmax.f32 %v105_v43, %v106_v52  ;;  %v137_v7 = vrot.slane %v136_v63, 4  ;;  %v143_v8 = vsel %vm72_vm0, %v28_v54, -inf  ;;  %v150_v9 = vsel %vm72_vm0, %v30_v55, -inf }
  0x11   :  { %v742_v10 = vmax.f32 %v112_v57, %v113_v1  ;;  %v744_v11 = vmax.f32 %v119_v58, %v120_v2  ;;  %v127_v12 = vrot.slane %v126_v3, 1  ;;  %v131_v13 = vmax.f32 %v129_v62, %v130_v4  ;;  %v44_v57 = vld [vmem:[%s1205_s0 + $0x120] sm:$0xff] }
  0x12   :  { %v138_v16 = vmax.f32 %v136_v63, %v137_v7  ;;  %v144_v17 = vrot.slane %v143_v8, 4  ;;  %v151_v18 = vrot.slane %v150_v9, 4  ;;  %v157_v19 = vsel %vm72_vm0, %v32_v0, -inf  ;;  %v46_v0 = vld [vmem:[%s1205_s0 + $0x130] sm:$0xff] }
  0x13   :  { %v753_v20 = vmax.f32 %v126_v3, %v127_v12  ;;  %v132_v21 = vrot.slane %v131_v13, 2  ;;  %v158_v22 = vrot.slane %v157_v19, 4  ;;  %v164_v23 = vsel %vm72_vm0, %v34_v5, -inf  ;;  %v48_v5 = vld [vmem:[%s1205_s0 + $0x140] sm:$0xff] }
  0x14   :  { %v139_v24 = vrot.slane %v138_v16, 2  ;;  %v145_v25 = vmax.f32 %v143_v8, %v144_v17  ;;  %v152_v26 = vmax.f32 %v150_v9, %v151_v18  ;;  %v165_v27 = vrot.slane %v164_v23, 4  ;;  %v50_v17 = vld [vmem:[%s1205_s0 + $0x150] sm:$0xff] }
  0x15   :  { %v133_v28 = vmax.f32 %v131_v13, %v132_v21  ;;  %v159_v29 = vmax.f32 %v157_v19, %v158_v22  ;;  %v171_v30 = vsel %vm72_vm0, %v36_v14, -inf  ;;  %v178_v31 = vsel %vm72_vm0, %v38_v15, -inf }
  0x16   :  { %v140_v32 = vmax.f32 %v138_v16, %v139_v24  ;;  %v146_v33 = vrot.slane %v145_v25, 2  ;;  %v153_v34 = vrot.slane %v152_v26, 2  ;;  %v166_v35 = vmax.f32 %v164_v23, %v165_v27  ;;  %v52_v23 = vld [vmem:[%s1205_s0 + $0x160] sm:$0xff] }
  0x17   :  { %v134_v36 = vrot.slane %v133_v28, 1  ;;  %v160_v37 = vrot.slane %v159_v29, 2  ;;  %v172_v38 = vrot.slane %v171_v30, 4  ;;  %v179_v39 = vrot.slane %v178_v31, 4 }
  0x18   :  { %v141_v41 = vrot.slane %v140_v32, 1  ;;  %v147_v42 = vmax.f32 %v145_v25, %v146_v33  ;;  %v154_v43 = vmax.f32 %v152_v26, %v153_v34  ;;  %v167_v44 = vrot.slane %v166_v35, 2 }
  0x19   :  { %v761_v45 = vmax.f32 %v133_v28, %v134_v36  ;;  %v161_v46 = vmax.f32 %v159_v29, %v160_v37  ;;  %v173_v47 = vmax.f32 %v171_v30, %v172_v38  ;;  %v180_v48 = vmax.f32 %v178_v31, %v179_v39 }
  0x1a   :  { %v766_v51 = vmax.f32 %v140_v32, %v141_v41  ;;  %v148_v52 = vrot.slane %v147_v42, 1  ;;  %v155_v54 = vrot.slane %v154_v43, 1  ;;  %v168_v55 = vmax.f32 %v166_v35, %v167_v44  ;;  %v54_v32 = vld [vmem:[%s1205_s0 + $0x170] sm:$0xff] }
  0x1b   :  { %v162_v58 = vrot.slane %v161_v46, 1  ;;  %v174_v59 = vrot.slane %v173_v47, 2  ;;  %v181_v62 = vrot.slane %v180_v48, 2  ;;  %v185_v63 = vsel %vm72_vm0, %v40_v40, -inf }
  0x1c   :  { %v775_v1 = vmax.f32 %v147_v42, %v148_v52  ;;  %v777_v2 = vmax.f32 %v154_v43, %v155_v54  ;;  %v169_v3 = vrot.slane %v168_v55, 1  ;;  %v186_v4 = vrot.slane %v185_v63, 4 }
  0x1d   :  { %v782_v7 = vmax.f32 %v161_v46, %v162_v58  ;;  %v175_v8 = vmax.f32 %v173_v47, %v174_v59  ;;  %v182_v9 = vmax.f32 %v180_v48, %v181_v62  ;;  %v192_v12 = vsel %vm72_vm0, %v42_v49, -inf  ;;  %v56_v46 = vld [vmem:[%s1205_s0 + $0x180] sm:$0xff]  ;;  %v58_v59 = vld [vmem:[%s1205_s0 + $0x190] sm:$0xff] }
  0x1e   :  { %v785_v13 = vmax.f32 %v168_v55, %v169_v3  ;;  %v187_v14 = vmax.f32 %v185_v63, %v186_v4  ;;  %v193_v15 = vrot.slane %v192_v12, 4  ;;  %v199_v16 = vsel %vm72_vm0, %v44_v57, -inf }
  0x1f   :  { %v176_v18 = vrot.slane %v175_v8, 1  ;;  %v183_v19 = vrot.slane %v182_v9, 1  ;;  %v200_v21 = vrot.slane %v199_v16, 4  ;;  %v206_v22 = vsel %vm72_vm0, %v46_v0, -inf }
  0x20   :  { %v188_v24 = vrot.slane %v187_v14, 2  ;;  %v194_v25 = vmax.f32 %v192_v12, %v193_v15  ;;  %v207_v26 = vrot.slane %v206_v22, 4  ;;  %v213_v27 = vsel %vm72_vm0, %v48_v5, -inf  ;;  %v60_v12 = vld [vmem:[%s1205_s0 + $0x1a0] sm:$0xff] }
  0x21   :  { %v796_v28 = vmax.f32 %v175_v8, %v176_v18  ;;  %v798_v29 = vmax.f32 %v182_v9, %v183_v19  ;;  %v201_v30 = vmax.f32 %v199_v16, %v200_v21  ;;  %v214_v31 = vrot.slane %v213_v27, 4 }
  0x22   :  { %v189_v33 = vmax.f32 %v187_v14, %v188_v24  ;;  %v195_v34 = vrot.slane %v194_v25, 2  ;;  %v208_v35 = vmax.f32 %v206_v22, %v207_v26  ;;  %v220_v36 = vsel %vm72_vm0, %v50_v17, -inf  ;;  %v62_v14 = vld [vmem:[%s1205_s0 + $0x1b0] sm:$0xff]  ;;  %v64_v24 = vld [vmem:[%s1205_s0 + $0x1c0] sm:$0xff] }
  0x23   :  { %v202_v37 = vrot.slane %v201_v30, 2  ;;  %v215_v38 = vmax.f32 %v213_v27, %v214_v31  ;;  %v221_v39 = vrot.slane %v220_v36, 4  ;;  %v227_v40 = vsel %vm72_vm0, %v52_v23, -inf }
  0x24   :  { %v190_v41 = vrot.slane %v189_v33, 1  ;;  %v196_v42 = vmax.f32 %v194_v25, %v195_v34  ;;  %v209_v43 = vrot.slane %v208_v35, 2  ;;  %v228_v44 = vrot.slane %v227_v40, 4 }
  0x25   :  { %v203_v47 = vmax.f32 %v201_v30, %v202_v37  ;;  %v216_v48 = vrot.slane %v215_v38, 2  ;;  %v222_v49 = vmax.f32 %v220_v36, %v221_v39  ;;  %v234_v52 = vsel %vm72_vm0, %v54_v32, -inf  ;;  %v68_v36 = vld [vmem:[%s1205_s0 + $0x1e0] sm:$0xff] }
  0x26   :  { %v809_v54 = vmax.f32 %v189_v33, %v190_v41  ;;  %v197_v55 = vrot.slane %v196_v42, 1  ;;  %v210_v57 = vmax.f32 %v208_v35, %v209_v43  ;;  %v229_v58 = vmax.f32 %v227_v40, %v228_v44  ;;  %v66_v35 = vld [vmem:[%s1205_s0 + $0x1d0] sm:$0xff] }
  0x27   :  { %v204_v62 = vrot.slane %v203_v47, 1  ;;  %v217_v63 = vmax.f32 %v215_v38, %v216_v48  ;;  %v223_v0 = vrot.slane %v222_v49, 2  ;;  %v235_v3 = vrot.slane %v234_v52, 4 }
  0x28   :  { %v814_v4 = vmax.f32 %v196_v42, %v197_v55  ;;  %v211_v5 = vrot.slane %v210_v57, 1  ;;  %v230_v8 = vrot.slane %v229_v58, 2  ;;  %v241_v9 = vsel %vm72_vm0, %v56_v46, -inf }
  0x29   :  { %v823_v15 = vmax.f32 %v203_v47, %v204_v62  ;;  %v218_v16 = vrot.slane %v217_v63, 1  ;;  %v224_v17 = vmax.f32 %v222_v49, %v223_v0  ;;  %v236_v18 = vmax.f32 %v234_v52, %v235_v3  ;;  %v70_v52 = vld [vmem:[%s1205_s0 + $0x1f0] sm:$0xff] }
  0x2a   :  { %v825_v19 = vmax.f32 %v210_v57, %v211_v5  ;;  %v231_v21 = vmax.f32 %v229_v58, %v230_v8  ;;  %v242_v22 = vrot.slane %v241_v9, 4  ;;  %v248_v23 = vsel %vm72_vm0, %v58_v59, -inf }
  0x2b   :  { %v831_v25 = vmax.f32 %v217_v63, %v218_v16  ;;  %v225_v26 = vrot.slane %v224_v17, 1  ;;  %v237_v27 = vrot.slane %v236_v18, 2  ;;  %v249_v30 = vrot.slane %v248_v23, 4 }
  0x2c   :  { %v232_v31 = vrot.slane %v231_v21, 1  ;;  %v243_v32 = vmax.f32 %v241_v9, %v242_v22  ;;  %v255_v33 = vsel %vm72_vm0, %v60_v12, -inf  ;;  %v262_v34 = vsel %vm72_vm0, %v62_v14, -inf }
  0x2d   :  { %v841_v37 = vmax.f32 %v224_v17, %v225_v26  ;;  %v238_v38 = vmax.f32 %v236_v18, %v237_v27  ;;  %v250_v39 = vmax.f32 %v248_v23, %v249_v30  ;;  %v256_v40 = vrot.slane %v255_v33, 4 }
  0x2e   :  { %v843_v41 = vmax.f32 %v231_v21, %v232_v31  ;;  %v244_v42 = vrot.slane %v243_v32, 2  ;;  %v263_v43 = vrot.slane %v262_v34, 4  ;;  %v269_v44 = vsel %vm72_vm0, %v64_v24, -inf }
  0x2f   :  { %v239_v46 = vrot.slane %v238_v38, 1  ;;  %v251_v47 = vrot.slane %v250_v39, 2  ;;  %v257_v48 = vmax.f32 %v255_v33, %v256_v40  ;;  %v270_v49 = vrot.slane %v269_v44, 4 }
  0x30   :  { %v245_v55 = vmax.f32 %v243_v32, %v244_v42  ;;  %v264_v57 = vmax.f32 %v262_v34, %v263_v43  ;;  %v276_v58 = vsel %vm72_vm0, %v66_v35, -inf  ;;  %v283_v59 = vsel %vm72_vm0, %v68_v36, -inf }
  0x31   :  { %v851_v62 = vmax.f32 %v238_v38, %v239_v46  ;;  %v252_v63 = vmax.f32 %v250_v39, %v251_v47  ;;  %v258_v0 = vrot.slane %v257_v48, 2  ;;  %v271_v3 = vmax.f32 %v269_v44, %v270_v49 }
  0x32   :  { %v246_v5 = vrot.slane %v245_v55, 1  ;;  %v265_v8 = vrot.slane %v264_v57, 2  ;;  %v277_v9 = vrot.slane %v276_v58, 4  ;;  %v284_v12 = vrot.slane %v283_v59, 4 }
  0x33   :  { %v253_v14 = vrot.slane %v252_v63, 1  ;;  %v259_v16 = vmax.f32 %v257_v48, %v258_v0  ;;  %v272_v17 = vrot.slane %v271_v3, 2  ;;  %v290_v18 = vsel %vm72_vm0, %v70_v52, -inf }
  0x34   :  { %v854_v21 = vmax.f32 %v245_v55, %v246_v5  ;;  %v266_v22 = vmax.f32 %v264_v57, %v265_v8  ;;  %v278_v23 = vmax.f32 %v276_v58, %v277_v9  ;;  %v285_v24 = vmax.f32 %v283_v59, %v284_v12 }
  0x35   :  { %v856_v26 = vmax.f32 %v252_v63, %v253_v14  ;;  %v260_v27 = vrot.slane %v259_v16, 1  ;;  %v273_v30 = vmax.f32 %v271_v3, %v272_v17  ;;  %v291_v31 = vrot.slane %v290_v18, 4 }
  0x36   :  { %v267_v32 = vrot.slane %v266_v22, 1  ;;  %v279_v33 = vrot.slane %v278_v23, 2  ;;  %v286_v34 = vrot.slane %v285_v24, 2  ;;  %v297_v35 = vsel %vm72_vm0, %v713_v50, -inf }
  0x37   :  { %v261_v36 = vmax.f32 %v259_v16, %v260_v27  ;;  %v274_v38 = vrot.slane %v273_v30, 1  ;;  %v292_v39 = vmax.f32 %v290_v18, %v291_v31  ;;  %v298_v40 = vsel %vm72_vm0, %v724_v56, -inf }
  0x38   :  { %v268_v42 = vmax.f32 %v266_v22, %v267_v32  ;;  %v280_v43 = vmax.f32 %v278_v23, %v279_v33  ;;  %v287_v44 = vmax.f32 %v285_v24, %v286_v34  ;;  %v299_v46 = vsel %vm72_vm0, %v726_v60, -inf }
  0x39   :  { %v275_v47 = vmax.f32 %v273_v30, %v274_v38  ;;  %v293_v48 = vrot.slane %v292_v39, 2  ;;  %v300_v49 = vmax.f32 %v297_v35, %v299_v46  ;;  %v301_v52 = vsel %vm72_vm0, %v728_v61, -inf }
  0x3a   :  { %v281_v50 = vrot.slane %v280_v43, 1  ;;  %v288_v55 = vrot.slane %v287_v44, 1  ;;  %v302_v57 = vmax.f32 %v298_v40, %v301_v52  ;;  %v303_v58 = vsel %vm72_vm0, %v738_v6, -inf }
  0x3b   :  { %v294_v56 = vmax.f32 %v292_v39, %v293_v48  ;;  %v304_v59 = vmax.f32 %v300_v49, %v303_v58  ;;  %v305_v63 = vsel %vm72_vm0, %v742_v10, -inf  ;;  %v307_v60 = vsel %vm72_vm0, %v744_v11, -inf  ;;  %v17_v48 = vld [vmem:[%s1205_s0 + $0x48] sm:$0xff] }
  0x3c   :  { %v282_v0 = vmax.f32 %v280_v43, %v281_v50  ;;  %v289_v3 = vmax.f32 %v287_v44, %v288_v55  ;;  %v306_v5 = vmax.f32 %v302_v57, %v305_v63  ;;  %v309_v61 = vsel %vm72_vm0, %v753_v20, -inf  ;;  %v21_v63 = vld [vmem:[%s1205_s0 + $0x68] sm:$0xff] }
  0x3d   :  { %v295_v8 = vrot.slane %v294_v56, 1  ;;  %v308_v9 = vmax.f32 %v304_v59, %v307_v60  ;;  %v312_v12 = vsel %vm72_vm0, %v809_v54, -inf  ;;  %v313_v6 = vsel %vm72_vm0, %v814_v4, -inf }
  0x3e   :  { %v310_v14 = vmax.f32 %v306_v5, %v309_v61  ;;  %v314_v10 = vsel %vm72_vm0, %v823_v15, -inf  ;;  %v316_v11 = vsel %vm72_vm0, %v825_v19, -inf  ;;  %v318_v16 = vsel %vm72_vm0, %v831_v25, -inf }
  0x3f   :  { %v296_v17 = vmax.f32 %v294_v56, %v295_v8  ;;  %v315_v20 = vmax.f32 %v312_v12, %v314_v10  ;;  %v317_v18 = vmax.f32 %v313_v6, %v316_v11  ;;  %v320_v22 = vsel %vm72_vm0, %v841_v37, -inf  ;;  %v23_v6 = vld [vmem:[%s1205_s0 + $0x78] sm:$0xff] }
  0x40   :  { %v886_v54 = vmax.f32 %v308_v9, %v310_v14  ;;  %v322_v4 = vsel %vm72_vm0, %v843_v41, -inf  ;;  %v324_v15 = vsel %vm72_vm0, %v851_v62, -inf  ;;  %v330_v19 = vsel %vm72_vm0, %v761_v45, -inf }
  0x41   :  { %v319_v23 = vmax.f32 %v315_v20, %v318_v16  ;;  %v321_v24 = vmax.f32 %v317_v18, %v320_v22  ;;  %v331_v25 = vsel %vm72_vm0, %v766_v51, -inf  ;;  %v332_v27 = vsel %vm72_vm0, %v775_v1, -inf }
  0x42   :  { %328 = vst.msk [vmem:[%s1206_s1 + $0x1] sm:$0x1] %vm327_vm1, %v886_v54  ;;  %v333_v37 = vmax.f32 %v330_v19, %v332_v27  ;;  %v334_v41 = vsel %vm72_vm0, %v777_v2, -inf  ;;  %v336_v45 = vsel %vm72_vm0, %v782_v7, -inf  ;;  %v338_v62 = vsel %vm72_vm0, %v785_v13, -inf  ;;  %v11_v7 = vld [vmem:[%s1205_s0 + $0x18] sm:$0xff] }
  0x43   :  { %v323_v51 = vmax.f32 %v319_v23, %v322_v4  ;;  %v325_v30 = vmax.f32 %v321_v24, %v324_v15  ;;  %v335_v31 = vmax.f32 %v331_v25, %v334_v41  ;;  %v340_v1 = vsel %vm72_vm0, %v796_v28, -inf }
  0x44   :  { %v337_v32 = vmax.f32 %v333_v37, %v336_v45  ;;  %v342_v33 = vsel %vm72_vm0, %v798_v29, -inf  ;;  %v345_v34 = vsel %vm72_vm0, %v854_v21, -inf  ;;  %v346_v2 = vsel %vm72_vm0, %v856_v26, -inf  ;;  %v13_v29 = vld [vmem:[%s1205_s0 + $0x28] sm:$0xff]  ;;  %v15_v21 = vld [vmem:[%s1205_s0 + $0x38] sm:$0xff] }
  0x45   :  { %v920_v13 = vmax.f32 %v323_v51, %v325_v30  ;;  %v339_v35 = vmax.f32 %v335_v31, %v338_v62  ;;  %v347_v38 = vsel %vm72_vm0, %v261_v36, -inf  ;;  %v349_v28 = vsel %vm72_vm0, %v268_v42, -inf  ;;  %v25_v51 = vld [vmem:[%s1205_s0 + $0x88] sm:$0xff] }
  0x46   :  { %v341_v26 = vmax.f32 %v337_v32, %v340_v1  ;;  %v348_v39 = vmax.f32 %v345_v34, %v347_v38  ;;  %v350_v40 = vmax.f32 %v346_v2, %v349_v28  ;;  %v351_v43 = vsel %vm72_vm0, %v275_v47, -inf  ;;  %v19_v47 = vld [vmem:[%s1205_s0 + $0x58] sm:$0xff]  ;;  %v29_v38 = vld [vmem:[%s1205_s0 + $0xa8] sm:$0xff] }
  0x47   :  { %329 = vst.msk [vmem:[%s1206_s1 + $0x9] sm:$0x1] %vm327_vm1, %v920_v13  ;;  %v343_v36 = vmax.f32 %v339_v35, %v342_v33  ;;  %v353_v42 = vsel %vm72_vm0, %v282_v0, -inf  ;;  %v355_v44 = vsel %vm72_vm0, %v289_v3, -inf  ;;  %v357_v46 = vsel %vm72_vm0, %v296_v17, -inf  ;;  %v27_v35 = vld [vmem:[%s1205_s0 + $0x98] sm:$0xff] }
  0x48   :  { %v352_v49 = vmax.f32 %v348_v39, %v351_v43  ;;  %v354_v52 = vmax.f32 %v350_v40, %v353_v42  ;;  %v363_v50 = vrot.slane %v716_v53, 4  ;;  %v369_v55 = vsel %vm72_vm0, %v11_v7, -inf  ;;  %v31_v42 = vld [vmem:[%s1205_s0 + $0xb8] sm:$0xff] }
  0x49   :  { %v947_v57 = vmax.f32 %v341_v26, %v343_v36  ;;  %v370_v58 = vrot.slane %v369_v55, 4  ;;  %v376_v56 = vsel %vm72_vm0, %v13_v29, -inf  ;;  %v383_v59 = vsel %vm72_vm0, %v15_v21, -inf }
  0x4a   :  { %v356_v60 = vmax.f32 %v352_v49, %v355_v44  ;;  %v358_v0 = vmax.f32 %v354_v52, %v357_v46  ;;  %v364_v3 = vmax.f32 %v716_v53, %v363_v50  ;;  %v377_v5 = vrot.slane %v376_v56, 4  ;;  %v33_v44 = vld [vmem:[%s1205_s0 + $0xc8] sm:$0xff] }
  0x4b   :  { %360 = vst.msk [vmem:[%s1206_s1 + $0x2] sm:$0x1] %vm327_vm1, %v947_v57  ;;  %v371_v61 = vmax.f32 %v369_v55, %v370_v58  ;;  %v384_v8 = vrot.slane %v383_v59, 4  ;;  %v390_v9 = vsel %vm72_vm0, %v17_v48, -inf  ;;  %v397_v12 = vsel %vm72_vm0, %v19_v47, -inf }
  0x4c   :  { %v965_v14 = vmax.f32 %v356_v60, %v358_v0  ;;  %v365_v53 = vrot.slane %v364_v3, 2  ;;  %v378_v10 = vmax.f32 %v376_v56, %v377_v5  ;;  %v391_v11 = vrot.slane %v390_v9, 4  ;;  %v35_v56 = vld [vmem:[%s1205_s0 + $0xd8] sm:$0xff] }
  0x4d   :  { %v372_v16 = vrot.slane %v371_v61, 2  ;;  %v385_v17 = vmax.f32 %v383_v59, %v384_v8  ;;  %v398_v20 = vrot.slane %v397_v12, 4  ;;  %v404_v18 = vsel %vm72_vm0, %v21_v63, -inf  ;;  %v37_v59 = vld [vmem:[%s1205_s0 + $0xe8] sm:$0xff] }
  0x4e   :  { %361 = vst.msk [vmem:[%s1206_s1 + $0xa] sm:$0x1] %vm327_vm1, %v965_v14  ;;  %v366_v22 = vmax.f32 %v364_v3, %v365_v53  ;;  %v379_v4 = vrot.slane %v378_v10, 2  ;;  %v392_v15 = vmax.f32 %v390_v9, %v391_v11  ;;  %v405_v19 = vrot.slane %v404_v18, 4  ;;  %v39_v11 = vld [vmem:[%s1205_s0 + $0xf8] sm:$0xff] }
  0x4f   :  { %v373_v23 = vmax.f32 %v371_v61, %v372_v16  ;;  %v386_v24 = vrot.slane %v385_v17, 2  ;;  %v399_v25 = vmax.f32 %v397_v12, %v398_v20  ;;  %v411_v27 = vsel %vm72_vm0, %v23_v6, -inf }
  0x50   :  { %v367_v37 = vrot.slane %v366_v22, 1  ;;  %v380_v41 = vmax.f32 %v378_v10, %v379_v4  ;;  %v393_v45 = vrot.slane %v392_v15, 2  ;;  %v406_v62 = vmax.f32 %v404_v18, %v405_v19 }
  0x51   :  { %v374_v30 = vrot.slane %v373_v23, 1  ;;  %v387_v31 = vmax.f32 %v385_v17, %v386_v24  ;;  %v400_v1 = vrot.slane %v399_v25, 2  ;;  %v412_v32 = vrot.slane %v411_v27, 4 }
  0x52   :  { %v977_v33 = vmax.f32 %v366_v22, %v367_v37  ;;  %v381_v34 = vrot.slane %v380_v41, 1  ;;  %v394_v2 = vmax.f32 %v392_v15, %v393_v45  ;;  %v407_v7 = vrot.slane %v406_v62, 2 }
  0x53   :  { %v985_v28 = vmax.f32 %v373_v23, %v374_v30  ;;  %v388_v29 = vrot.slane %v387_v31, 1  ;;  %v401_v21 = vmax.f32 %v399_v25, %v400_v1  ;;  %v413_v26 = vmax.f32 %v411_v27, %v412_v32 }
  0x54   :  { %v987_v39 = vmax.f32 %v380_v41, %v381_v34  ;;  %v395_v40 = vrot.slane %v394_v2, 1  ;;  %v408_v43 = vmax.f32 %v406_v62, %v407_v7  ;;  %v418_v36 = vsel %vm72_vm0, %v25_v51, -inf  ;;  %v41_v51 = vld [vmem:[%s1205_s0 + $0x108] sm:$0xff] }
  0x55   :  { %v996_v46 = vmax.f32 %v387_v31, %v388_v29  ;;  %v402_v48 = vrot.slane %v401_v21, 1  ;;  %v414_v47 = vrot.slane %v413_v26, 2  ;;  %v419_v49 = vrot.slane %v418_v36, 4 }
  0x56   :  { %v998_v52 = vmax.f32 %v394_v2, %v395_v40  ;;  %v409_v50 = vrot.slane %v408_v43, 1  ;;  %v425_v55 = vsel %vm72_vm0, %v27_v35, -inf  ;;  %v432_v58 = vsel %vm72_vm0, %v29_v38, -inf  ;;  %v43_v38 = vld [vmem:[%s1205_s0 + $0x118] sm:$0xff] }
  0x57   :  { %v1008_v63 = vmax.f32 %v401_v21, %v402_v48  ;;  %v415_v60 = vmax.f32 %v413_v26, %v414_v47  ;;  %v420_v0 = vmax.f32 %v418_v36, %v419_v49  ;;  %v426_v3 = vrot.slane %v425_v55, 4  ;;  %v45_v48 = vld [vmem:[%s1205_s0 + $0x128] sm:$0xff]  ;;  %v47_v47 = vld [vmem:[%s1205_s0 + $0x138] sm:$0xff] }
  0x58   :  { %v1010_v5 = vmax.f32 %v408_v43, %v409_v50  ;;  %v433_v61 = vrot.slane %v432_v58, 4  ;;  %v439_v8 = vsel %vm72_vm0, %v31_v42, -inf  ;;  %v446_v9 = vsel %vm72_vm0, %v33_v44, -inf }
  0x59   :  { %v416_v12 = vrot.slane %v415_v60, 1  ;;  %v421_v6 = vrot.slane %v420_v0, 2  ;;  %v427_v53 = vmax.f32 %v425_v55, %v426_v3  ;;  %v440_v10 = vrot.slane %v439_v8, 4  ;;  %v49_v3 = vld [vmem:[%s1205_s0 + $0x148] sm:$0xff] }
  0x5a   :  { %v434_v16 = vmax.f32 %v432_v58, %v433_v61  ;;  %v447_v17 = vrot.slane %v446_v9, 4  ;;  %v453_v20 = vsel %vm72_vm0, %v35_v56, -inf  ;;  %v460_v18 = vsel %vm72_vm0, %v37_v59, -inf }
  0x5b   :  { %v1019_v22 = vmax.f32 %v415_v60, %v416_v12  ;;  %v422_v4 = vmax.f32 %v420_v0, %v421_v6  ;;  %v428_v15 = vrot.slane %v427_v53, 2  ;;  %v441_v19 = vmax.f32 %v439_v8, %v440_v10  ;;  %v51_v6 = vld [vmem:[%s1205_s0 + $0x158] sm:$0xff] }
  0x5c   :  { %v435_v23 = vrot.slane %v434_v16, 2  ;;  %v448_v24 = vmax.f32 %v446_v9, %v447_v17  ;;  %v454_v25 = vrot.slane %v453_v20, 4  ;;  %v461_v27 = vrot.slane %v460_v18, 4 }
  0x5d   :  { %v423_v37 = vrot.slane %v422_v4, 1  ;;  %v429_v41 = vmax.f32 %v427_v53, %v428_v15  ;;  %v442_v45 = vrot.slane %v441_v19, 2  ;;  %v467_v62 = vsel %vm72_vm0, %v39_v11, -inf  ;;  %v53_v15 = vld [vmem:[%s1205_s0 + $0x168] sm:$0xff] }
  0x5e   :  { %v436_v30 = vmax.f32 %v434_v16, %v435_v23  ;;  %v449_v31 = vrot.slane %v448_v24, 2  ;;  %v455_v1 = vmax.f32 %v453_v20, %v454_v25  ;;  %v462_v32 = vmax.f32 %v460_v18, %v461_v27 }
  0x5f   :  { %v1025_v34 = vmax.f32 %v422_v4, %v423_v37  ;;  %v430_v2 = vrot.slane %v429_v41, 1  ;;  %v443_v7 = vmax.f32 %v441_v19, %v442_v45  ;;  %v468_v35 = vrot.slane %v467_v62, 4 }
  0x60   :  { %v437_v29 = vrot.slane %v436_v30, 1  ;;  %v450_v21 = vmax.f32 %v448_v24, %v449_v31  ;;  %v456_v26 = vrot.slane %v455_v1, 2  ;;  %v463_v40 = vrot.slane %v462_v32, 2 }
  0x61   :  { %v1030_v43 = vmax.f32 %v429_v41, %v430_v2  ;;  %v444_v36 = vrot.slane %v443_v7, 1  ;;  %v469_v42 = vmax.f32 %v467_v62, %v468_v35  ;;  %v474_v44 = vsel %vm72_vm0, %v41_v51, -inf  ;;  %v55_v62 = vld [vmem:[%s1205_s0 + $0x178] sm:$0xff] }
  0x62   :  { %v1039_v49 = vmax.f32 %v436_v30, %v437_v29  ;;  %v451_v50 = vrot.slane %v450_v21, 1  ;;  %v457_v55 = vmax.f32 %v455_v1, %v456_v26  ;;  %v464_v58 = vmax.f32 %v462_v32, %v463_v40  ;;  %v57_v40 = vld [vmem:[%s1205_s0 + $0x188] sm:$0xff] }
  0x63   :  { %v1041_v56 = vmax.f32 %v443_v7, %v444_v36  ;;  %v470_v59 = vrot.slane %v469_v42, 2  ;;  %v475_v60 = vrot.slane %v474_v44, 4  ;;  %v481_v0 = vsel %vm72_vm0, %v43_v38, -inf }
  0x64   :  { %v1047_v61 = vmax.f32 %v450_v21, %v451_v50  ;;  %v458_v8 = vrot.slane %v457_v55, 1  ;;  %v465_v9 = vrot.slane %v464_v58, 1  ;;  %v482_v12 = vrot.slane %v481_v0, 4 }
  0x65   :  { %v471_v53 = vmax.f32 %v469_v42, %v470_v59  ;;  %v476_v10 = vmax.f32 %v474_v44, %v475_v60  ;;  %v488_v11 = vsel %vm72_vm0, %v45_v48, -inf  ;;  %v495_v16 = vsel %vm72_vm0, %v47_v47, -inf  ;;  %v59_v59 = vld [vmem:[%s1205_s0 + $0x198] sm:$0xff] }
  0x66   :  { %v1054_v17 = vmax.f32 %v457_v55, %v458_v8  ;;  %v1056_v20 = vmax.f32 %v464_v58, %v465_v9  ;;  %v483_v18 = vmax.f32 %v481_v0, %v482_v12  ;;  %v489_v4 = vrot.slane %v488_v11, 4 }
  0x67   :  { %v472_v19 = vrot.slane %v471_v53, 1  ;;  %v477_v23 = vrot.slane %v476_v10, 2  ;;  %v496_v24 = vrot.slane %v495_v16, 4  ;;  %v502_v25 = vsel %vm72_vm0, %v49_v3, -inf }
  0x68   :  { %v484_v27 = vrot.slane %v483_v18, 2  ;;  %v490_v37 = vmax.f32 %v488_v11, %v489_v4  ;;  %v503_v41 = vrot.slane %v502_v25, 4  ;;  %v509_v45 = vsel %vm72_vm0, %v51_v6, -inf  ;;  %v63_v11 = vld [vmem:[%s1205_s0 + $0x1b8] sm:$0xff] }
  0x69   :  { %v1066_v51 = vmax.f32 %v471_v53, %v472_v19  ;;  %v478_v30 = vmax.f32 %v476_v10, %v477_v23  ;;  %v497_v31 = vmax.f32 %v495_v16, %v496_v24  ;;  %v510_v1 = vrot.slane %v509_v45, 4  ;;  %v61_v10 = vld [vmem:[%s1205_s0 + $0x1a8] sm:$0xff] }
  0x6a   :  { %v485_v32 = vmax.f32 %v483_v18, %v484_v27  ;;  %v491_v2 = vrot.slane %v490_v37, 2  ;;  %v504_v7 = vmax.f32 %v502_v25, %v503_v41  ;;  %v516_v35 = vsel %vm72_vm0, %v53_v15, -inf  ;;  %v65_v27 = vld [vmem:[%s1205_s0 + $0x1c8] sm:$0xff] }
  0x6b   :  { %v479_v38 = vrot.slane %v478_v30, 1  ;;  %v498_v29 = vrot.slane %v497_v31, 2  ;;  %v511_v21 = vmax.f32 %v509_v45, %v510_v1  ;;  %v517_v26 = vrot.slane %v516_v35, 4 }
  0x6c   :  { %v486_v36 = vrot.slane %v485_v32, 1  ;;  %v492_v42 = vmax.f32 %v490_v37, %v491_v2  ;;  %v505_v44 = vrot.slane %v504_v7, 2  ;;  %v523_v48 = vsel %vm72_vm0, %v55_v62, -inf  ;;  %v67_v37 = vld [vmem:[%s1205_s0 + $0x1d8] sm:$0xff] }
  0x6d   :  { %v1073_v47 = vmax.f32 %v478_v30, %v479_v38  ;;  %v499_v50 = vmax.f32 %v497_v31, %v498_v29  ;;  %v512_v55 = vrot.slane %v511_v21, 2  ;;  %v518_v58 = vmax.f32 %v516_v35, %v517_v26 }
  0x6e   :  { %v1078_v60 = vmax.f32 %v485_v32, %v486_v36  ;;  %v493_v0 = vrot.slane %v492_v42, 1  ;;  %v506_v3 = vmax.f32 %v504_v7, %v505_v44  ;;  %v524_v8 = vrot.slane %v523_v48, 4  ;;  %v69_v7 = vld [vmem:[%s1205_s0 + $0x1e8] sm:$0xff] }
  0x6f   :  { %v500_v9 = vrot.slane %v499_v50, 1  ;;  %v513_v12 = vmax.f32 %v511_v21, %v512_v55  ;;  %v519_v6 = vrot.slane %v518_v58, 2  ;;  %v530_v53 = vsel %vm72_vm0, %v57_v40, -inf }
  0x70   :  { %v1087_v16 = vmax.f32 %v492_v42, %v493_v0  ;;  %v507_v18 = vrot.slane %v506_v3, 1  ;;  %v525_v4 = vmax.f32 %v523_v48, %v524_v8  ;;  %v531_v15 = vrot.slane %v530_v53, 4 }
  0x71   :  { %v1089_v19 = vmax.f32 %v499_v50, %v500_v9  ;;  %v514_v23 = vrot.slane %v513_v12, 1  ;;  %v520_v24 = vmax.f32 %v518_v58, %v519_v6  ;;  %v537_v25 = vsel %vm72_vm0, %v59_v59, -inf  ;;  %v71_v58 = vld [vmem:[%s1205_s0 + $0x1f8] sm:$0xff] }
  0x72   :  { %v1098_v41 = vmax.f32 %v506_v3, %v507_v18  ;;  %v526_v45 = vrot.slane %v525_v4, 2  ;;  %v532_v62 = vmax.f32 %v530_v53, %v531_v15  ;;  %v538_v30 = vrot.slane %v537_v25, 4 }
  0x73   :  { %v1100_v31 = vmax.f32 %v513_v12, %v514_v23  ;;  %v521_v1 = vrot.slane %v520_v24, 1  ;;  %v544_v32 = vsel %vm72_vm0, %v61_v10, -inf  ;;  %v551_v2 = vsel %vm72_vm0, %v63_v11, -inf }
  0x74   :  { %v527_v35 = vmax.f32 %v525_v4, %v526_v45  ;;  %v533_v38 = vrot.slane %v532_v62, 2  ;;  %v539_v29 = vmax.f32 %v537_v25, %v538_v30  ;;  %v545_v21 = vrot.slane %v544_v32, 4 }
  0x75   :  { %v1107_v26 = vmax.f32 %v520_v24, %v521_v1  ;;  %v552_v40 = vrot.slane %v551_v2, 4  ;;  %v558_v36 = vsel %vm72_vm0, %v65_v27, -inf  ;;  %v565_v42 = vsel %vm72_vm0, %v67_v37, -inf }
  0x76   :  { %v528_v44 = vrot.slane %v527_v35, 1  ;;  %v534_v48 = vmax.f32 %v532_v62, %v533_v38  ;;  %v540_v50 = vrot.slane %v539_v29, 2  ;;  %v546_v55 = vmax.f32 %v544_v32, %v545_v21 }
  0x77   :  { %v553_v59 = vmax.f32 %v551_v2, %v552_v40  ;;  %v559_v0 = vrot.slane %v558_v36, 4  ;;  %v566_v3 = vrot.slane %v565_v42, 4  ;;  %v572_v8 = vsel %vm72_vm0, %v69_v7, -inf }
  0x78   :  { %v529_v9 = vmax.f32 %v527_v35, %v528_v44  ;;  %v535_v12 = vrot.slane %v534_v48, 1  ;;  %v541_v6 = vmax.f32 %v539_v29, %v540_v50  ;;  %v547_v53 = vrot.slane %v546_v55, 2 }
  0x79   :  { %v554_v10 = vrot.slane %v553_v59, 2  ;;  %v560_v11 = vmax.f32 %v558_v36, %v559_v0  ;;  %v567_v18 = vmax.f32 %v565_v42, %v566_v3  ;;  %v573_v4 = vrot.slane %v572_v8, 4 }
  0x7a   :  { %v1115_v15 = vmax.f32 %v534_v48, %v535_v12  ;;  %v542_v23 = vrot.slane %v541_v6, 1  ;;  %v548_v24 = vmax.f32 %v546_v55, %v547_v53  ;;  %v579_v25 = vsel %vm72_vm0, %v71_v58, -inf }
  0x7b   :  { %v555_v27 = vmax.f32 %v553_v59, %v554_v10  ;;  %v561_v37 = vrot.slane %v560_v11, 2  ;;  %v568_v45 = vrot.slane %v567_v18, 2  ;;  %v574_v62 = vmax.f32 %v572_v8, %v573_v4 }
  0x7c   :  { %v1118_v30 = vmax.f32 %v541_v6, %v542_v23  ;;  %v549_v1 = vrot.slane %v548_v24, 1  ;;  %v580_v32 = vrot.slane %v579_v25, 4  ;;  %v586_v2 = vsel %vm72_vm0, %v977_v33, -inf }
  0x7d   :  { %v556_v7 = vrot.slane %v555_v27, 1  ;;  %v562_v35 = vmax.f32 %v560_v11, %v561_v37  ;;  %v569_v38 = vmax.f32 %v567_v18, %v568_v45  ;;  %v575_v29 = vrot.slane %v574_v62, 2 }
  0x7e   :  { %v550_v21 = vmax.f32 %v548_v24, %v549_v1  ;;  %v581_v40 = vmax.f32 %v579_v25, %v580_v32  ;;  %v587_v36 = vsel %vm72_vm0, %v985_v28, -inf  ;;  %v588_v42 = vsel %vm72_vm0, %v987_v39, -inf }
  0x7f   :  { %v557_v44 = vmax.f32 %v555_v27, %v556_v7  ;;  %v563_v48 = vrot.slane %v562_v35, 1  ;;  %v570_v50 = vrot.slane %v569_v38, 1  ;;  %v576_v55 = vmax.f32 %v574_v62, %v575_v29 }
  0x80   :  { %v582_v58 = vrot.slane %v581_v40, 2  ;;  %v589_v59 = vmax.f32 %v586_v2, %v588_v42  ;;  %v590_v33 = vsel %vm72_vm0, %v996_v46, -inf  ;;  %v592_v0 = vsel %vm72_vm0, %v998_v52, -inf }
  0x81   :  { %v564_v3 = vmax.f32 %v562_v35, %v563_v48  ;;  %v571_v8 = vmax.f32 %v569_v38, %v570_v50  ;;  %v577_v12 = vrot.slane %v576_v55, 1  ;;  %v591_v6 = vmax.f32 %v587_v36, %v590_v33 }
  0x82   :  { %v583_v28 = vmax.f32 %v581_v40, %v582_v58  ;;  %v593_v53 = vmax.f32 %v589_v59, %v592_v0  ;;  %v594_v39 = vsel %vm72_vm0, %v1008_v63, -inf  ;;  %v596_v10 = vsel %vm72_vm0, %v1010_v5, -inf }
  0x83   :  { %v578_v11 = vmax.f32 %v576_v55, %v577_v12  ;;  %v595_v18 = vmax.f32 %v591_v6, %v594_v39  ;;  %v598_v46 = vsel %vm72_vm0, %v1019_v22, -inf  ;;  %v601_v52 = vsel %vm72_vm0, %v1073_v47, -inf }
  0x84   :  { %v584_v4 = vrot.slane %v583_v28, 1  ;;  %v597_v23 = vmax.f32 %v593_v53, %v596_v10  ;;  %v602_v24 = vsel %vm72_vm0, %v1078_v60, -inf  ;;  %v603_v25 = vsel %vm72_vm0, %v1087_v16, -inf }
  0x85   :  { %v599_v63 = vmax.f32 %v595_v18, %v598_v46  ;;  %v604_v27 = vmax.f32 %v601_v52, %v603_v25  ;;  %v605_v5 = vsel %vm72_vm0, %v1089_v19, -inf  ;;  %v607_v37 = vsel %vm72_vm0, %v1098_v41, -inf }
  0x86   :  { %v585_v22 = vmax.f32 %v583_v28, %v584_v4  ;;  %v606_v45 = vmax.f32 %v602_v24, %v605_v5  ;;  %v609_v47 = vsel %vm72_vm0, %v1100_v31, -inf  ;;  %v611_v62 = vsel %vm72_vm0, %v1107_v26, -inf }
  0x87   :  { %v600_v60 = vmax.f32 %v597_v23, %v599_v63  ;;  %v608_v1 = vmax.f32 %v604_v27, %v607_v37  ;;  %v613_v16 = vsel %vm72_vm0, %v529_v9, -inf  ;;  %v618_v32 = vsel %vm72_vm0, %v1025_v34, -inf }
  0x88   :  { %v610_v2 = vmax.f32 %v606_v45, %v609_v47  ;;  %v619_v19 = vsel %vm72_vm0, %v1030_v43, -inf  ;;  %v620_v41 = vsel %vm72_vm0, %v1039_v49, -inf  ;;  %v622_v31 = vsel %vm72_vm0, %v1041_v56, -inf }
  0x89   :  { %v612_v7 = vmax.f32 %v608_v1, %v611_v62  ;;  %616 = vst.msk [vmem:[%s1206_s1 + $0x3] sm:$0x1] %vm327_vm1, %v600_v60  ;;  %v621_v26 = vmax.f32 %v618_v32, %v620_v41  ;;  %v623_v9 = vmax.f32 %v619_v19, %v622_v31  ;;  %v624_v34 = vsel %vm72_vm0, %v1047_v61, -inf }
  0x8a   :  { %v614_v35 = vmax.f32 %v610_v2, %v613_v16  ;;  %v626_v43 = vsel %vm72_vm0, %v1054_v17, -inf  ;;  %v628_v49 = vsel %vm72_vm0, %v1056_v20, -inf  ;;  %v630_v56 = vsel %vm72_vm0, %v1066_v51, -inf }
  0x8b   :  { %v625_v38 = vmax.f32 %v621_v26, %v624_v34  ;;  %v627_v29 = vmax.f32 %v623_v9, %v626_v43  ;;  %v633_v40 = vsel %vm72_vm0, %v1115_v15, -inf  ;;  %v634_v36 = vsel %vm72_vm0, %v1118_v30, -inf }
  0x8c   :  { %v615_v42 = vmax.f32 %v612_v7, %v614_v35  ;;  %v635_v61 = vsel %vm72_vm0, %v550_v21, -inf  ;;  %v637_v48 = vsel %vm72_vm0, %v557_v44, -inf  ;;  %v639_v17 = vsel %vm72_vm0, %v564_v3, -inf }
  0x8d   :  { %v629_v50 = vmax.f32 %v625_v38, %v628_v49  ;;  %v631_v20 = vmax.f32 %v627_v29, %v630_v56  ;;  %v636_v55 = vmax.f32 %v633_v40, %v635_v61  ;;  %v638_v58 = vmax.f32 %v634_v36, %v637_v48 }
  0x8e   :  { %617 = vst.msk [vmem:[%s1206_s1 + $0xb] sm:$0x1] %vm327_vm1, %v615_v42  ;;  %v641_v51 = vsel %vm72_vm0, %v571_v8, -inf  ;;  %v643_v15 = vsel %vm72_vm0, %v578_v11, -inf  ;;  %v645_v30 = vsel %vm72_vm0, %v585_v22, -inf  ;;  %v650_v21 = vmax.f32 %v886_v54, %v947_v57 }
  0x8f   :  { %v632_v44 = vmax.f32 %v629_v50, %v631_v20  ;;  %v640_v59 = vmax.f32 %v636_v55, %v639_v17  ;;  %v642_v33 = vmax.f32 %v638_v58, %v641_v51  ;;  %v651_v0 = vmax.f32 %v920_v13, %v965_v14 }
  0x90   :  { %v652_v3 = vmax.f32 %v650_v21, %v600_v60 }
  0x91   :  { %v644_v12 = vmax.f32 %v640_v59, %v643_v15  ;;  %v646_v6 = vmax.f32 %v642_v33, %v645_v30  ;;  %648 = vst.msk [vmem:[%s1206_s1 + $0x4] sm:$0x1] %vm327_vm1, %v632_v44  ;;  %v653_v8 = vmax.f32 %v651_v0, %v615_v42 }
  0x92   :  { %v654_v28 = vmax.f32 %v652_v3, %v632_v44 }
  0x93   :  { %v647_v53 = vmax.f32 %v644_v12, %v646_v6 }
  0x94   :  { %656 = vst.msk [vmem:[%s1206_s1] sm:$0x1] %vm327_vm1, %v654_v28 }
  0x95   :  { %649 = vst.msk [vmem:[%s1206_s1 + $0xc] sm:$0x1] %vm327_vm1, %v647_v53  ;;  %v655_v54 = vmax.f32 %v653_v8, %v647_v53 }
  0x97   :  { %657 = vst.msk [vmem:[%s1206_s1 + $0x8] sm:$0x1] %vm327_vm1, %v655_v54 }

</bundles_post_ra>
